<compile_context>
chip_gen: v7x
topology: tpu7x:2x2x1
jax: 0.10.0
libtpu: 0.0.40
codegen_flags: <defaults>
</compile_context>

<pallas_src>
import functools

import jax
import jax.numpy as jnp
from jax import lax
from jax.experimental import pallas as pl
from jax.experimental.pallas import tpu as pltpu


_DEFAULT_TB_MW = 256         # mw batch tile (MXU path), multiple of 8
_MAX_TB_ELEM = 2048          # elementwise batch tile upper bound
_ELEM_TILE_BYTES = 2 << 20   # target ~2 MiB per (tb, Lp) f32 input tile


def _round_up(x, m):
    return ((x + m - 1) // m) * m


def _pad_to(x, shape, value=0):
    pads = [(0, s - d) for d, s in zip(x.shape, shape)]
    if any(p[1] for p in pads):
        return jnp.pad(x, pads, constant_values=value)
    return x


def _pick_tb(batch, tb):
    # Round the tile to a multiple of 8 (sublane constraint) and never (much)
    # larger than the batch.
    tb = _round_up(max(int(tb), 8), 8)
    return min(tb, _round_up(batch, 8))


def _pick_tb_elem(batch, lp, tb=None):
    # Elementwise variants are HBM-bound: amortize the ~0.35 us per-step
    # overhead with big tiles (~2 MiB -> 2048 rows at 128 labels).
    if tb is None:
        tb = max(8, min(_MAX_TB_ELEM, _ELEM_TILE_BYTES // (lp * 4)))
    return _pick_tb(batch, tb)


def _vmem_limit(footprint_bytes):
    # Generation-aware VMEM budget: footprint + headroom, capped at 75% of the
    # physical per-core VMEM (v7x has the smallest at 64 MiB/TC).
    try:
        cap = pltpu.get_tpu_info().vmem_capacity_bytes
    except Exception:
        cap = 64 << 20
    limit = max(int(footprint_bytes) + (8 << 20), 16 << 20)
    return int(min(limit, (cap * 3) // 4))


# ---------------------------------------------------------------------------
# mw kernel: streamed per-worker confusion matrices, gated by presence table
# ---------------------------------------------------------------------------
def _mw_kernel(present_ref, x_ref, wk_ref, wt_ref, o_ref, acc_ref):
    # present_ref: SMEM (num_tiles, n_workers) int32 (scalar-prefetched)
    # x_ref : VMEM (tb, Lp)        logits tile (native dtype)
    # wk_ref: VMEM (tb, 1) int32   worker id per row
    # wt_ref: VMEM (1, Lp, Lp)     W[w].T for the current worker grid step
    # o_ref : VMEM (tb, Lp)
    # acc_ref: VMEM (tb, Lp) f32   per-tile accumulator (scratch)
    t = pl.program_id(0)
    w = pl.program_id(1)

    @pl.when(w == 0)
    def _init():
        acc_ref[...] = jnp.zeros_like(acc_ref)

    @pl.when(present_ref[t, w] > 0)
    def _compute():
        part = jnp.dot(x_ref[...], wt_ref[0],
                       preferred_element_type=jnp.float32)       # (tb, Lp) f32
        mask = (wk_ref[...] == w).astype(jnp.float32)            # (tb, 1)
        acc_ref[...] += mask * part

    @pl.when(w == pl.num_programs(1) - 1)
    def _write():
        o_ref[...] = acc_ref[...].astype(o_ref.dtype)


def crowd_layer_mw(outputs, workers, weight, tb=_DEFAULT_TB_MW, sort_by_worker=True):
    B, L = outputs.shape
    n_workers = weight.shape[0]
    workers = workers.astype(jnp.int32).reshape(B)

    # Sort rows by worker id so each batch tile touches only a few workers;
    # the presence table below then skips almost every (tile, worker) matmul.
    if sort_by_worker:
        order = jnp.argsort(workers)
        inv = jnp.argsort(order)
        x_in = outputs[order]
        wk_in = workers[order]
    else:
        inv = None
        x_in, wk_in = outputs, workers

    Lp = _round_up(L, 128)
    tb = _pick_tb(B, tb)
    Bp = _round_up(B, tb)
    num_tiles = Bp // tb

    x = _pad_to(x_in, (Bp, Lp))
    # Padded rows get an out-of-range worker id: they match no worker, never
    # trigger a gated matmul, and stay zero (sliced off afterwards).
    wk = _pad_to(wk_in, (Bp,), value=n_workers)
    # present[t, w] == 1 iff worker w has at least one row in batch tile t.
    present = jnp.any(
        wk.reshape(num_tiles, tb)[:, :, None]
        == jnp.arange(n_workers, dtype=jnp.int32)[None, None, :],
        axis=1,
    ).astype(jnp.int32)
    wk = wk.reshape(Bp, 1)
    # Pre-transposed confusion matrices: kernel computes x @ W[w].T directly
    # (no in-kernel transpose through the XLU).
    wt = _pad_to(jnp.swapaxes(weight, 1, 2), (n_workers, Lp, Lp))

    x_isz = int(x.dtype.itemsize)
    wt_isz = int(wt.dtype.itemsize)
    footprint = (2 * tb * Lp * x_isz          # logits tile (double-buffered)
                 + 2 * tb * Lp * x_isz        # output tile
                 + 2 * Lp * Lp * wt_isz       # streamed W[w].T block
                 + 2 * tb * 128 * 4           # worker-id column (lane padded)
                 + tb * Lp * 4)               # f32 accumulator scratch

    # TODO(synk): for very large n_workers x num_tiles, a full MoE-style layout
    # (group offsets via scalar prefetch, one matmul per present group) would
    # also avoid streaming absent workers' weight blocks over HBM.
    grid_spec = pltpu.PrefetchScalarGridSpec(
        num_scalar_prefetch=1,
        grid=(num_tiles, n_workers),
        in_specs=[
            pl.BlockSpec((tb, Lp), lambda t, w, p: (t, 0)),
            pl.BlockSpec((tb, 1), lambda t, w, p: (t, 0)),
            pl.BlockSpec((1, Lp, Lp), lambda t, w, p: (w, 0, 0)),
        ],
        out_specs=pl.BlockSpec((tb, Lp), lambda t, w, p: (t, 0)),
        scratch_shapes=[pltpu.VMEM((tb, Lp), jnp.float32)],
    )
    out = pl.pallas_call(
        _mw_kernel,
        out_shape=jax.ShapeDtypeStruct((Bp, Lp), outputs.dtype),
        grid_spec=grid_spec,
        compiler_params=pltpu.CompilerParams(
            dimension_semantics=("parallel", "arbitrary"),
            vmem_limit_bytes=_vmem_limit(footprint),
        ),
        cost_estimate=pl.CostEstimate(
            flops=2 * Bp * Lp * Lp * 2,   # sorted tiles see ~<=2 workers each
            transcendentals=0,
            bytes_accessed=(2 * Bp * Lp * x_isz
                            + num_tiles * n_workers * Lp * Lp * wt_isz
                            + Bp * 4),
        ),
    )(present, x, wk, wt)

    out = out[:B, :L]
    if inv is not None:
        out = out[inv]
    return out


# ---------------------------------------------------------------------------
# Elementwise kernels (vw / vb / vw+b): onehot-matmul gather + streaming FMA
# ---------------------------------------------------------------------------
def _onehot(wk, n_workers):
    # wk: (tb, 1) int32 -> (tb, n_workers) float32 one-hot
    ids = lax.broadcasted_iota(jnp.int32, (wk.shape[0], n_workers), 1)
    return (wk == ids).astype(jnp.float32)


def _vw_kernel(n_workers, x_ref, wk_ref, w_ref, o_ref):
    oh = _onehot(wk_ref[...], n_workers)
    s = jnp.dot(oh, w_ref[...].astype(jnp.float32),
                preferred_element_type=jnp.float32)                # (tb, Lp)
    o_ref[...] = (s * x_ref[...]).astype(o_ref.dtype)


def _vb_kernel(n_workers, x_ref, wk_ref, w_ref, o_ref):
    oh = _onehot(wk_ref[...], n_workers)
    b = jnp.dot(oh, w_ref[...].astype(jnp.float32),
                preferred_element_type=jnp.float32)
    o_ref[...] = (x_ref[...] + b).astype(o_ref.dtype)


def _vwb_kernel(n_workers, x_ref, wk_ref, s_ref, b_ref, o_ref):
    oh = _onehot(wk_ref[...], n_workers)
    s = jnp.dot(oh, s_ref[...].astype(jnp.float32),
                preferred_element_type=jnp.float32)
    b = jnp.dot(oh, b_ref[...].astype(jnp.float32),
                preferred_element_type=jnp.float32)
    o_ref[...] = (s * x_ref[...] + b).astype(o_ref.dtype)


def _elementwise_call(kernel_fn, outputs, workers, *params, tb=None):
    B, L = outputs.shape
    n_workers = params[0].shape[0]
    Lp = _round_up(L, 128)
    tb = _pick_tb_elem(B, Lp, tb)
    Bp = _round_up(B, tb)

    x = _pad_to(outputs, (Bp, Lp))
    # Out-of-range worker id for padded rows -> zero one-hot, zero contribution.
    wk = _pad_to(workers.astype(jnp.int32).reshape(B, 1), (Bp, 1), value=n_workers)
    # Params keep their native dtype (tiny tables; cast to f32 inside kernel).
    params_p = tuple(_pad_to(p, (n_workers, Lp)) for p in params)
    # TODO(synk): constant-index param blocks could be single-buffered with
    # pipeline_mode=pl.Buffered(1); footprint is small enough to skip it here.
    param_specs = [pl.BlockSpec((n_workers, Lp), lambda t: (0, 0)) for _ in params_p]

    x_isz = int(x.dtype.itemsize)
    p_bytes = sum(int(p.dtype.itemsize) * _round_up(n_workers, 8) * Lp
                  for p in params_p)
    footprint = 4 * tb * Lp * x_isz + 2 * tb * 128 * 4 + 2 * p_bytes

    out = pl.pallas_call(
        functools.partial(kernel_fn, n_workers),
        out_shape=jax.ShapeDtypeStruct((Bp, Lp), outputs.dtype),
        grid=(Bp // tb,),
        in_specs=[pl.BlockSpec((tb, Lp), lambda t: (t, 0)),
                  pl.BlockSpec((tb, 1), lambda t: (t, 0))] + param_specs,
        out_specs=pl.BlockSpec((tb, Lp), lambda t: (t, 0)),
        compiler_params=pltpu.CompilerParams(
            dimension_semantics=("parallel",),
            vmem_limit_bytes=_vmem_limit(footprint),
        ),
        cost_estimate=pl.CostEstimate(
            flops=2 * Bp * n_workers * Lp * len(params) + 2 * Bp * Lp * len(params),
            transcendentals=0,
            bytes_accessed=2 * Bp * Lp * x_isz + p_bytes + Bp * 4,
        ),
    )(x, wk, *params_p)
    return out[:B, :L]


crowd_layer_vw = functools.partial(_elementwise_call, _vw_kernel)
crowd_layer_vb = functools.partial(_elementwise_call, _vb_kernel)
crowd_layer_vw_b = functools.partial(_elementwise_call, _vwb_kernel)


class CrowdLayer:
    """JAX/Pallas port of crowdkit.learning.CrowdLayer (forward only)."""

    def __init__(self, num_labels, n_workers, conn_type="mw", key=None, perturb=0.0):
        self.conn_type = conn_type
        self.n_workers = n_workers
        key = jax.random.PRNGKey(0) if key is None else key
        if conn_type == "mw":
            init = jnp.broadcast_to(
                jnp.eye(num_labels, dtype=jnp.float32),
                (n_workers, num_labels, num_labels),
            )
            self.weight = init + perturb * jax.random.normal(key, init.shape, jnp.float32)
        elif conn_type == "vw":
            init = jnp.ones((n_workers, num_labels), jnp.float32)
            self.weight = init + perturb * jax.random.normal(key, init.shape, jnp.float32)
        elif conn_type == "vb":
            init = jnp.zeros((n_workers, num_labels), jnp.float32)
            self.weight = init + perturb * jax.random.normal(key, init.shape, jnp.float32)
        elif conn_type == "vw+b":
            ks, kb = jax.random.split(key)
            self.scale = jnp.ones((n_workers, num_labels), jnp.float32) + \
                perturb * jax.random.normal(ks, (n_workers, num_labels), jnp.float32)
            self.bias = jnp.zeros((n_workers, num_labels), jnp.float32) + \
                perturb * jax.random.normal(kb, (n_workers, num_labels), jnp.float32)
        else:
            raise ValueError("Unknown connection type for CrowdLayer.")

    def __call__(self, outputs, workers):
        if self.conn_type == "mw":
            return crowd_layer_mw(outputs, workers, self.weight)
        elif self.conn_type == "vw":
            return crowd_layer_vw(outputs, workers, self.weight)
        elif self.conn_type == "vb":
            return crowd_layer_vb(outputs, workers, self.weight)
        elif self.conn_type == "vw+b":
            return crowd_layer_vw_b(outputs, workers, self.scale, self.bias)
        else:
            raise ValueError("Unknown connection type for CrowdLayer.")


# ---------------------------------------------------------------------------
# Pure-JAX references (mirror the PyTorch functions)
# ---------------------------------------------------------------------------
def _ref_mw(outputs, workers, weight):
    return jnp.einsum("lij,lj->li", weight[workers], outputs,
                      precision=lax.Precision.HIGHEST)


def _ref_vw(outputs, workers, weight):
    return weight[workers] * outputs


def _ref_vb(outputs, workers, weight):
    return outputs + weight[workers]


def _ref_vwb(outputs, workers, scale, bias):
    return scale[workers] * outputs + bias[workers]


if __name__ == "__main__":
    key = jax.random.PRNGKey(0)
    ok = True

    # --- small, non-aligned shapes (exercise batch + label padding) ---------
    B, L, n_workers = 13, 10, 3
    kx, kw, kp = jax.random.split(key, 3)
    outputs = jax.random.normal(kx, (B, L), jnp.float32)
    workers = jax.random.randint(kw, (B,), 0, n_workers, jnp.int32)

    cl_mw = CrowdLayer(L, n_workers, conn_type="mw", key=kp, perturb=0.05)
    y = jax.block_until_ready(cl_mw(outputs, workers))
    ok &= bool(jnp.allclose(y, _ref_mw(outputs, workers, cl_mw.weight),
                            atol=1e-3, rtol=1e-3))

    cl_vw = CrowdLayer(L, n_workers, conn_type="vw", key=kp, perturb=0.05)
    y = jax.block_until_ready(cl_vw(outputs, workers))
    ok &= bool(jnp.allclose(y, _ref_vw(outputs, workers, cl_vw.weight), atol=1e-5))

    cl_vb = CrowdLayer(L, n_workers, conn_type="vb", key=kp, perturb=0.05)
    y = jax.block_until_ready(cl_vb(outputs, workers))
    ok &= bool(jnp.allclose(y, _ref_vb(outputs, workers, cl_vb.weight), atol=1e-5))

    cl_vwb = CrowdLayer(L, n_workers, conn_type="vw+b", key=kp, perturb=0.05)
    y = jax.block_until_ready(cl_vwb(outputs, workers))
    ok &= bool(
        jnp.allclose(y, _ref_vwb(outputs, workers, cl_vwb.scale, cl_vwb.bias), atol=1e-5)
    )

    # --- multi-tile path (grid > 1, worker-grid reduction, gating) ----------
    B2, L2, nw2 = 48, 128, 4
    k1, k2, k3, k4 = jax.random.split(jax.random.PRNGKey(1), 4)
    x2 = jax.random.normal(k1, (B2, L2), jnp.float32)
    w2 = jax.random.randint(k2, (B2,), 0, nw2, jnp.int32)
    conf2 = jax.random.normal(k3, (nw2, L2, L2), jnp.float32) * 0.1
    vec2 = jax.random.normal(k4, (nw2, L2), jnp.float32)

    y = jax.block_until_ready(crowd_layer_mw(x2, w2, conf2, tb=16))
    ok &= bool(jnp.allclose(y, _ref_mw(x2, w2, conf2), atol=1e-3, rtol=1e-3))

    # unsorted path as well (pure masked reduction over the worker grid axis)
    y = jax.block_until_ready(crowd_layer_mw(x2, w2, conf2, tb=16, sort_by_worker=False))
    ok &= bool(jnp.allclose(y, _ref_mw(x2, w2, conf2), atol=1e-3, rtol=1e-3))

    y = jax.block_until_ready(crowd_layer_vw(x2, w2, vec2, tb=16))
    ok &= bool(jnp.allclose(y, _ref_vw(x2, w2, vec2), atol=1e-5))

    if not ok:
        raise SystemExit("mismatch vs reference")
    print("KERNEL_OK")
</pallas_src>

<mosaic_0001>
module attributes {stable_mosaic.version = 11 : i64} {
  func.func @_mw_kernel(%arg0: i32, %arg1: i32, %arg2: memref<1x3xi32, #tpu.memory_space<smem>>, %arg3: memref<16x128xf32, #tpu.memory_space<vmem>>, %arg4: memref<16x1xi32, #tpu.memory_space<vmem>>, %arg5: memref<1x128x128xf32, #tpu.memory_space<vmem>>, %arg6: memref<16x128xf32, #tpu.memory_space<vmem>>, %arg7: memref<16x128xf32, #tpu.memory_space<vmem>>) attributes {dimension_semantics = [#tpu.dimension_semantics<parallel>, #tpu.dimension_semantics<arbitrary>], iteration_bounds = array<i64: 1, 3>, scalar_prefetch = 1 : i64, scratch_operands = 1 : i64, tpu.core_type = #tpu.core_type<tc>, window_params = [{transform_indices = @transform_0, window_bounds = array<i64: 16, 128>}, {transform_indices = @transform_1, window_bounds = array<i64: 16, 1>}, {transform_indices = @transform_2, window_bounds = array<i64: 1, 128, 128>}, {transform_indices = @transform_3, window_bounds = array<i64: 16, 128>}]} {
    %c0_i32 = arith.constant 0 : i32
    %0 = arith.cmpi eq, %arg1, %c0_i32 : i32
    %1 = arith.extui %0 : i1 to i32
    %c0_i32_0 = arith.constant 0 : i32
    %2 = arith.cmpi ne, %1, %c0_i32_0 : i32
    scf.if %2 {
      %cst = arith.constant 0.000000e+00 : f32
      %12 = vector.broadcast %cst : f32 to vector<16x128xf32>
      %c0 = arith.constant 0 : index
      %c0_4 = arith.constant 0 : index
      %13 = vector.load %arg7[%c0, %c0_4] : memref<16x128xf32, #tpu.memory_space<vmem>>, vector<16x128xf32>
      tpu.vector_store %arg7[%c0, %c0_4], %12 {strides = array<i32>} : memref<16x128xf32, #tpu.memory_space<vmem>>, vector<16x128xf32>,
    } else {
    }
    %3 = arith.index_cast %arg0 : i32 to index
    %4 = arith.index_cast %arg1 : i32 to index
    %5 = memref.load %arg2[%3, %4] : memref<1x3xi32, #tpu.memory_space<smem>>
    %c0_i32_1 = arith.constant 0 : i32
    %6 = arith.cmpi sgt, %5, %c0_i32_1 : i32
    %7 = arith.extui %6 : i1 to i32
    %c0_i32_2 = arith.constant 0 : i32
    %8 = arith.cmpi ne, %7, %c0_i32_2 : i32
    scf.if %8 {
      %c0 = arith.constant 0 : index
      %c0_4 = arith.constant 0 : index
      %12 = vector.load %arg3[%c0, %c0_4] : memref<16x128xf32, #tpu.memory_space<vmem>>, vector<16x128xf32>
      %c0_5 = arith.constant 0 : index
      %c0_6 = arith.constant 0 : index
      %c0_7 = arith.constant 0 : index
      %13 = vector.load %arg5[%c0_5, %c0_6, %c0_7] : memref<1x128x128xf32, #tpu.memory_space<vmem>>, vector<1x128x128xf32>
      %14 = vector.shape_cast %13 : vector<1x128x128xf32> to vector<128x128xf32>
      %cst = arith.constant dense<0.000000e+00> : vector<16x128xf32>
      %15 = tpu.matmul %12, %14, %cst {dimension_numbers = #tpu.dot_dimension_numbers<[1], [0], [0], [1], [0, 0, 1, 1], [], []>} : vector<16x128xf32>, vector<128x128xf32>, vector<16x128xf32> -> vector<16x128xf32>
      %c0_8 = arith.constant 0 : index
      %c0_9 = arith.constant 0 : index
      %16 = vector.load %arg4[%c0_8, %c0_9] : memref<16x1xi32, #tpu.memory_space<vmem>>, vector<16x1xi32>
      %17 = vector.broadcast %arg1 : i32 to vector<16x1xi32>
      %18 = arith.cmpi eq, %16, %17 : vector<16x1xi32>
      %19 = arith.extui %18 : vector<16x1xi1> to vector<16x1xi32>
      %20 = arith.sitofp %19 : vector<16x1xi32> to vector<16x1xf32>
      %c0_10 = arith.constant 0 : index
      %c0_11 = arith.constant 0 : index
      %21 = vector.load %arg7[%c0_10, %c0_11] : memref<16x128xf32, #tpu.memory_space<vmem>>, vector<16x128xf32>
      %22 = vector.broadcast %20 : vector<16x1xf32> to vector<16x128xf32>
      %23 = arith.mulf %22, %15 : vector<16x128xf32>
      %24 = arith.addf %21, %23 : vector<16x128xf32>
      %c0_12 = arith.constant 0 : index
      %c0_13 = arith.constant 0 : index
      %25 = vector.load %arg7[%c0_12, %c0_13] : memref<16x128xf32, #tpu.memory_space<vmem>>, vector<16x128xf32>
      tpu.vector_store %arg7[%c0_12, %c0_13], %24 {strides = array<i32>} : memref<16x128xf32, #tpu.memory_space<vmem>>, vector<16x128xf32>,
    } else {
    }
    %c2_i32 = arith.constant 2 : i32
    %9 = arith.cmpi eq, %arg1, %c2_i32 : i32
    %10 = arith.extui %9 : i1 to i32
    %c0_i32_3 = arith.constant 0 : i32
    %11 = arith.cmpi ne, %10, %c0_i32_3 : i32
    scf.if %11 {
      %c0 = arith.constant 0 : index
      %c0_4 = arith.constant 0 : index
      %12 = vector.load %arg7[%c0, %c0_4] : memref<16x128xf32, #tpu.memory_space<vmem>>, vector<16x128xf32>
      %c0_5 = arith.constant 0 : index
      %c0_6 = arith.constant 0 : index
      %13 = vector.load %arg6[%c0_5, %c0_6] : memref<16x128xf32, #tpu.memory_space<vmem>>, vector<16x128xf32>
      tpu.vector_store %arg6[%c0_5, %c0_6], %12 {strides = array<i32>} : memref<16x128xf32, #tpu.memory_space<vmem>>, vector<16x128xf32>,
    } else {
    }
    return
  }
  func.func @transform_0(%arg0: i32, %arg1: i32, %arg2: memref<1x3xi32, #tpu.memory_space<smem>>) -> (i32, i32) {
    %c0_i32 = arith.constant 0 : i32
    %c0_i32_0 = arith.constant 0 : i32
    return %arg0, %c0_i32 : i32, i32
  }
  func.func @transform_1(%arg0: i32, %arg1: i32, %arg2: memref<1x3xi32, #tpu.memory_space<smem>>) -> (i32, i32) {
    %c0_i32 = arith.constant 0 : i32
    %c0_i32_0 = arith.constant 0 : i32
    return %arg0, %c0_i32 : i32, i32
  }
  func.func @transform_2(%arg0: i32, %arg1: i32, %arg2: memref<1x3xi32, #tpu.memory_space<smem>>) -> (i32, i32, i32) {
    %c0_i32 = arith.constant 0 : i32
    %c0_i32_0 = arith.constant 0 : i32
    %c0_i32_1 = arith.constant 0 : i32
    return %arg1, %c0_i32, %c0_i32_0 : i32, i32, i32
  }
  func.func @transform_3(%arg0: i32, %arg1: i32, %arg2: memref<1x3xi32, #tpu.memory_space<smem>>) -> (i32, i32) {
    %c0_i32 = arith.constant 0 : i32
    %c0_i32_0 = arith.constant 0 : i32
    return %arg0, %c0_i32 : i32, i32
  }
}

</mosaic_0001>

<bundles_post_ra>
// kernel: tpu_custom_call.1
= control target key start
LH: loop header
LB: loop body
LE: loop exit
PB: predicated region body
PF: predicated region fallthrough
CT: control target
= control target key end

     0   :  { %s1025_s0 = inlined_call_operand.vmem [shape: s32[1,3], index: 0, kind: input, shape index: {}]   ;;  %s1026_s1 = inlined_call_operand.vmem [shape: f32[16,128], index: 1, kind: input, shape index: {}]   ;;  %s1027_s2 = inlined_call_operand.vmem [shape: s32[16,1], index: 2, kind: input, shape index: {}]   ;;  %s1028_s3 = inlined_call_operand.hbm [shape: f32[3,128,128], index: 3, kind: input, shape index: {}]   ;;  %s1029_s4 = inlined_call_operand.hbm [shape: f32[16,128], index: 4, kind: output, shape index: {}]  }
   0x1   :  { %s9_s17 = sshll.u32 %s1025_s0, 4  ;;  %s10_s17 = int_to_ptr.vmem [resolvable:$true] %s9_s17 }
   0x2   :  { %s677_s18 = scalar_lea.vmem %s10_s17, 16  ;;  %p682_p1 = scmp.lt.s32.totalorder %s10_s17, %s10_s17 }
   0x3   :  { %p678_p0 = scmp.ne.s32.totalorder %s10_s17, %s677_s18  ;;  %p683_p2 = scmp.lt.s32.totalorder %s677_s18, %s677_s18 }
   0x5   :  { %p684_p3 = por %p683_p2, %p682_p1 }
   0x7   :  { %p685_p4 = pnand %p684_p3, %p678_p0 }
   0x9   :  { %688 = shalt.err (!%p685_p4)  }
   0xa   :  { %s803_s19 = smov [#allocation4]  }
   0xb   :  { %12 = dma.vmem_to_smem %s10_s17, 16, %s803_s19, [#allocation3] }
   0xc   :  { %769 = dma.done.wait [#allocation3], 16 }
   0xd   :  { %770 = vsyncadd [#allocation3], 4294967280 }
   0xe   :  { %14 = sfence }
   0xf   :  { %15 = vsyncpa [#allocation6], 0 }
  0x10   :  { %17 = vsyncpa [#allocation6 + $0x1], 0 }
  0x11   :  { %18 = vsyncpa [#allocation7], 0  ;;  %s841_s20 = smov 0   ;;  %s843_s21 = smov 0  }
  0x12   :  { %s845_s0 = smov 0   ;;  %s847_s22 = smov 0  }
  0x13   :  { %s849_s23 = smov 0   ;;  %s851_s24 = smov 0  }
  0x14 LB: > { %s495_s25 = sadd.s32 4294967295, %s801_s24   ;;  %s33_s26 = sadd.s32 1, %s797_s23  ;;  %s801_s24 = sphi %s851_s24, %s24_s24   ;;  %s797_s23 = sphi %s849_s23, %s1038_s23   ;;  %s793_s22 = sphi %s847_s22, %s1037_s22   ;;  %s789_s0 = sphi %s845_s0, %s1036_s0   ;;  %s785_s21 = sphi %s843_s21, %s1035_s21   ;;  %s781_s20 = sphi %s841_s20, %s1034_s20  }
  0x15   : > { %p34_p5 = scmp.ge.s32.totalorder %s33_s26, 3  ;;  %s95_s27 = sadd.s32 1, %s789_s0 }
  0x16   : > { %p102_p6 = scmp.ne.s32.totalorder %s789_s0, %s785_s21  ;;  %p103_p7 = scmp.eq.s32.totalorder %s801_s24, 0 }
  0x17   : > { %s1040_s26 = smov (%p34_p5, %s33_s26), 0  ;;  %p108_p9 = scmp.ne.s32.totalorder %s785_s21, %s781_s20 }
  0x18   : > { %p877_p8 = por %p103_p7, %p102_p6  ;;  %s92_s29 = ssub.s32 %s797_s23, %s1040_s26 }
  0x19   : > { %p109_p10 = scmp.eq.s32.totalorder %s495_s25, 0  ;;  %p93_p11 = scmp.eq.s32.totalorder %s92_s29, 0 }
  0x1a   : > { %p611_p13 = scmp.lt.s32.totalorder %s801_s24, 3  ;;  %s176_s6 = sand.u32 1, %s789_s0  }
  0x1b   : > { %p886_p12 = por %p109_p10, %p108_p9  ;;  %s515_s7 = sshll.u32 %s797_s23, 11 }
  0x1c   : > { %s892_s5 = scalar_select %p93_p11, %s789_s0, %s95_s27  }
  0x1d   : > { %s500_s8 = sshll.u32 %s176_s6, 7  ;;  %s899_s11 = scalar_lea.hbm %s1028_s3, %s515_s7 }
  0x1e   : > { %s180_s12 = scalar_lea.vmem [#allocation5], %s500_s8  ;;  %p903_p0 = pnand %p611_p13, %p877_p8 }
  0x1f   : > { %s187_s13 = sshll.u32 %s180_s12, 4  ;;  %s909_s15 = scalar_lea.sflag [#allocation6], %s176_s6  ;;  %s907_s13 = int_to_ptr.vmem [resolvable:$true] %s187_s13 }
  0x20   : > { %s689_s16 = scalar_lea.hbm %s899_s11, 2048  ;;  %p691_p2 = pneg %p903_p0 }
  0x21   : > { %p690_p1 = scmp.ne.s32.totalorder %s899_s11, %s689_s16  ;;  %s694_s19 = scalar_lea.hbm %s1028_s3, 6144 }
  0x22   : > { %p695_p5 = scmp.lt.u32.totalorder %s899_s11, %s1028_s3  ;;  %p696_p6 = scmp.lt.u32.totalorder %s694_s19, %s689_s16 }
  0x23   : > { %p692_p3 = pnand %p691_p2, %p690_p1  ;;  %p698_p8 = scmp.lt.u32.totalorder %s689_s16, %s899_s11 }
  0x24   : > { %p697_p7 = por %p696_p6, %p695_p5 }
  0x25   : > { %p693_p4 = pneg %p692_p3 }
  0x26   : > { %p699_p9 = por %p698_p8, %p697_p7 }
  0x28   : > { %p700_p10 = pnand %p699_p9, %p693_p4 }
  0x2a   : > { %703 = shalt.err (!%p700_p10)
}
  0x2b   : > { %s704_s28 = scalar_lea.vmem %s907_s13, 2048  ;;  %s804_s29 = smov [#allocation5]  }
  0x2c   : > { %p705_p11 = scmp.ne.s32.totalorder %s907_s13, %s704_s28  ;;  %s709_s6 = sshll.u32 %s804_s29, 4  ;;  %s710_s6 = int_to_ptr.vmem [resolvable:$false] %s709_s6 }
  0x2d   : > { %s711_s7 = scalar_lea.vmem %s710_s6, 4096  ;;  %p712_p3 = scmp.lt.s32.totalorder %s907_s13, %s710_s6 }
  0x2e   : > { %p707_p13 = pnand %p705_p11, %p691_p2  ;;  %p713_p5 = scmp.lt.s32.totalorder %s711_s7, %s704_s28 }
  0x30   : > { %p708_p1 = pneg %p707_p13  ;;  %p714_p6 = por %p713_p5, %p712_p3 }
  0x32   : > { %p715_p7 = pnand %p714_p6, %p708_p1 }
  0x34   : > { %718 = shalt.err (!%p715_p7)
}
  0x35   : > { %s805_s8 = smov 128   ;;  %s806_s9 = smov 8  }
  0x36   : > { %610 = dma.hbm_to_vmem [thread:$0]  (!%p903_p0), %s899_s11, 2048, %s907_s13, %s909_s15, %s805_s8, %s805_s8, %s806_s9  }
  0x37   : > { %p503_p2 = scmp.ge.s32.totalorder %s801_s24, 1  ;;  %p195_p4 = scmp.lt.s32.totalorder %s801_s24, 4 }
  0x39   : > { %p196_p8 = pnand %p503_p2, %p195_p4 }
  0x3a   : > { %s201_s10 = sand.u32 (!%p196_p8), 1, %s785_s21  }
  0x3b   : > { %199 = sbr.rel (%p196_p8) target bundleno = 374 (0x176), region = 32  ;;  %s504_s12 = sshll.u32 (!%p196_p8), %s201_s10, 7 }
  0x3c   : > { %s202_s16 = scalar_lea.sflag (!%p196_p8), [#allocation6], %s201_s10  ;;  %s940_s17 = scalar_lea.vmem (!%p196_p8), [#allocation5], %s504_s12 }
  0x42   : > { %772 = dma.done.wait (%p886_p12), %s202_s16, 2048  }
  0x43   : > { %774 = vsyncadd (%p886_p12), %s202_s16, 4294965248  ;;  %p505_p9 = scmp.ne.s32.totalorder %s793_s22, 0 }
  0x44   : > { %v807_v0 = vmov (!%p505_p9), 0.0  }
  0x45   : > { %249 = sbr.rel (%p505_p9) target bundleno = 76 (0x4c), region = 40  ;;  %250 = vst [vmem:[#allocation2] sm:$0xff] (!%p505_p9), %v807_v0  ;;  %251 = vst [vmem:[#allocation2 + $0x8] sm:$0xff] (!%p505_p9), %v807_v0 }
  0x4c PF: > { %s252_s11 = sshra.s32 %s793_s22, 7  ;;  %s257_s13 = sand.u32 127, %s793_s22 }
  0x4d   : > { %s506_s14 = sshll.u32 %s252_s11, 7 }
  0x4e   : > { %s258_s15 = sadd.s32 %s506_s14, %s257_s13 }
  0x4f   : > { %s259_s18 = sld [smem:[#allocation4 + %s258_s15]] }
  0x55   : > { %p507_p0 = scmp.le.s32.totalorder %s259_s18, 0 }
  0x56   : > { %v266_v1 = vld [vmem:[%s940_s17] sm:$0xff] (!%p507_p0)  ;;  %v267_v2 = vld [vmem:[%s940_s17 + $0x8] sm:$0xff] (!%p507_p0)  ;;  %v268_v3 = vld [vmem:[%s940_s17 + $0x10] sm:$0xff] (!%p507_p0)  ;;  %v808_v6 = vmov (!%p507_p0), 0   ;;  %v359_v10 = vstv (!%p507_p0), %s793_s22  ;;  %v809_v17 = vmov (!%p507_p0), 0.0  }
  0x57   : > { %263 = sbr.rel (%p507_p0) target bundleno = 339 (0x153), region = 44  ;;  %v569_v4 = vpack.c.bf16 (!%p507_p0), %v267_v2, %v266_v1  ;;  %v269_v5 = vld [vmem:[%s940_s17 + $0x18] sm:$0xff] (!%p507_p0)  ;;  %671 = vset.pattern.permute.xlu0 (!%p507_p0), %v808_v6  ;;  %v270_v8 = vld [vmem:[%s940_s17 + $0x20] sm:$0xff] (!%p507_p0)  ;;  %v271_v9 = vld [vmem:[%s940_s17 + $0x28] sm:$0xff] (!%p507_p0) }
  0x58   : > { %v573_v7 = vpack.c.bf16 (!%p507_p0), %v269_v5, %v268_v3  ;;  %v577_v11 = vpack.c.bf16 (!%p507_p0), %v271_v9, %v270_v8  ;;  %v272_v12 = vld [vmem:[%s940_s17 + $0x30] sm:$0xff] (!%p507_p0)  ;;  %v273_v14 = vld [vmem:[%s940_s17 + $0x38] sm:$0xff] (!%p507_p0)  ;;  %v274_v22 = vld [vmem:[%s940_s17 + $0x40] sm:$0xff] (!%p507_p0) }
  0x59   : > { %570 = vmatprep.subr.bf16.mxu0 (!%p507_p0), %v569_v4  ;;  %v264_v13 = vld [vmem:[%s1026_s1] sm:$0xff] (!%p507_p0)  ;;  %v358_v16 = vld [vmem:[%s1027_s2 + $0x8] sm:$0xff] (!%p507_p0)  ;;  %v581_v20 = vpack.c.bf16 (!%p507_p0), %v273_v14, %v272_v12  ;;  %v275_v23 = vld [vmem:[%s940_s17 + $0x48] sm:$0xff] (!%p507_p0) }
  0x5a   : > { %572 = vmatpush3.bf16.msra.mxu0 (!%p507_p0), %v569_v4  ;;  %566 = vmatprep.mubr.f32.mxu0 (!%p507_p0), %v264_v13  ;;  %v357_v15 = vld [vmem:[%s1027_s2] sm:$0xff] (!%p507_p0)  ;;  %vm361_vm1 = vcmp.eq.s32.totalorder (!%p507_p0), %v358_v16, %v359_v10  ;;  %v585_v24 = vpack.c.bf16 (!%p507_p0), %v275_v23, %v274_v22  ;;  %v277_v26 = vld [vmem:[%s940_s17 + $0x58] sm:$0xff] (!%p507_p0)  ;;  %v278_v28 = vld [vmem:[%s940_s17 + $0x60] sm:$0xff] (!%p507_p0) }
  0x5b   : > { %574 = vmatprep.subr.bf16.mxu0 (!%p507_p0), %v573_v7  ;;  %vm360_vm0 = vcmp.eq.s32.totalorder (!%p507_p0), %v357_v15, %v359_v10  ;;  %v509_v19 = vsel (!%p507_p0), %vm361_vm1, 1.0, %v809_v17  ;;  %v276_v25 = vld [vmem:[%s940_s17 + $0x50] sm:$0xff] (!%p507_p0)  ;;  %v279_v29 = vld [vmem:[%s940_s17 + $0x68] sm:$0xff] (!%p507_p0)  ;;  %v281_v32 = vld [vmem:[%s940_s17 + $0x78] sm:$0xff] (!%p507_p0) }
  0x5c   : > { %v508_v18 = vsel (!%p507_p0), %vm360_vm0, 1.0, %v809_v17  ;;  %v589_v27 = vpack.c.bf16 (!%p507_p0), %v277_v26, %v276_v25  ;;  %v593_v30 = vpack.c.bf16 (!%p507_p0), %v279_v29, %v278_v28  ;;  %v280_v31 = vld [vmem:[%s940_s17 + $0x70] sm:$0xff] (!%p507_p0)  ;;  %v265_v34 = vld [vmem:[%s1026_s1 + $0x8] sm:$0xff] (!%p507_p0) }
  0x5d   : > { %v672_v21 = vpack.i.bf16 (!%p507_p0), %v509_v19, %v508_v18  ;;  %v597_v33 = vpack.c.bf16 (!%p507_p0), %v281_v32, %v280_v31  ;;  %v367_v39 = vld [vmem:[#allocation2 + $0x8] sm:$0xff] (!%p507_p0)  ;;  %v366_v42 = vld [vmem:[#allocation2] sm:$0xff] (!%p507_p0) }
  0x5e   : > { %576 = vmatpush3.bf16.msra.mxu0 %v573_v7 }
  0x5f   : > { %578 = vmatprep.subr.bf16.mxu0 %v577_v11  ;;  %673 = vperm.xlu0 %671, %v672_v21  }
  0x62   : > { %580 = vmatpush3.bf16.msra.mxu0 %v577_v11 }
  0x63   : > { %582 = vmatprep.subr.bf16.mxu0 %v581_v20 }
  0x66   : > { %584 = vmatpush3.bf16.msra.mxu0 %v581_v20 }
  0x67   : > { %586 = vmatprep.subr.bf16.mxu0 %v585_v24 }
  0x6a   : > { %588 = vmatpush3.bf16.msra.mxu0 %v585_v24 }
  0x6b   : > { %590 = vmatprep.subr.bf16.mxu0 %v589_v27 }
  0x6e   : > { %592 = vmatpush3.bf16.msra.mxu0 %v589_v27 }
  0x6f   : > { %594 = vmatprep.subr.bf16.mxu0 %v593_v30 }
  0x72   : > { %596 = vmatpush3.bf16.msra.mxu0 %v593_v30 }
  0x73   : > { %598 = vmatprep.subr.bf16.mxu0 %v597_v33 }
  0x76   : > { %600 = vmatpush3.bf16.msra.mxu0 %v597_v33 }
  0x79   : > { %567 = vmatmul.mubr.f32.vlgmr.msra.gmra.mrb[0].mxu0 %v265_v34 }
  0xde   : > { %v674_v35 = vpop.permute.xlu0 %673 }
  0xdf   : > { %v676_v36 = vunpack.i.h.bf16 %v674_v35  ;;  %v675_v37 = vunpack.i.l.bf16 %v674_v35 }
 0x14c   : > { %v568_v38 = vpop.f32.mrb[0].mxu0 }
 0x14d   : > { %v379_v40 = vmul.f32 %v676_v36, %v568_v38  ;;  %v348_v41 = vpop.f32.mrb[1].mxu0 }
 0x14e   : > { %v378_v43 = vmul.f32 %v675_v37, %v348_v41 }
 0x14f   : > { %v381_v44 = vadd.f32 %v379_v40, %v367_v39 }
 0x150   : > { %v380_v45 = vadd.f32 %v378_v43, %v366_v42 }
 0x151   : > { %383 = vst [vmem:[#allocation2 + $0x8] sm:$0xff] %v381_v44 }
 0x152   : > { %382 = vst [vmem:[#allocation2] sm:$0xff] %v380_v45 }
 0x153 PF: > { %p510_p12 = scmp.ne.s32.totalorder %s793_s22, 2 }
 0x155   : > { %387 = sbr.rel (%p510_p12) target bundleno = 348 (0x15c), region = 48 }
 0x158   : > { %v389_v47 = vld [vmem:[#allocation2 + $0x8] sm:$0xff] (!%p510_p12) }
 0x159   : > { %v388_v46 = vld [vmem:[#allocation2] sm:$0xff] (!%p510_p12)  ;;  %391 = vst [vmem:[#allocation8 + $0x8] sm:$0xff] (!%p510_p12), %v389_v47 }
 0x15a   : > { %390 = vst [vmem:[#allocation8] sm:$0xff] (!%p510_p12), %v388_v46 }
 0x15c PF: > { %p981_p10 = scmp.eq.s32.totalorder %s495_s25, 2  ;;  %s810_s9 = smov [#allocation8]  }
 0x15d   : > { %s401_s10 = sshll.u32 %s810_s9, 4  ;;  %s402_s10 = int_to_ptr.vmem [resolvable:$true] %s401_s10 }
 0x15e   : > { %s719_s12 = scalar_lea.vmem %s402_s10, 256  ;;  %p726_p3 = scmp.lt.s32.totalorder %s402_s10, %s402_s10 }
 0x15f   : > { %p720_p11 = scmp.ne.s32.totalorder %s402_s10, %s719_s12  ;;  %p727_p5 = scmp.lt.s32.totalorder %s719_s12, %s719_s12 }
 0x161   : > { %p721_p13 = pnand %p720_p11, %p981_p10  ;;  %p728_p6 = por %p727_p5, %p726_p3 }
 0x163   : > { %p722_p1 = pneg %p721_p13 }
 0x165   : > { %p729_p7 = pnand %p728_p6, %p722_p1 }
 0x167   : > { %732 = shalt.err (!%p729_p7)
}
 0x168   : > { %s733_s25 = scalar_lea.hbm %s1029_s4, 256 }
 0x169   : > { %p734_p2 = scmp.ne.s32.totalorder %s1029_s4, %s733_s25  ;;  %p739_p9 = scmp.lt.u32.totalorder %s733_s25, %s1029_s4 }
 0x16b   : > { %p735_p4 = pnand %p734_p2, %p981_p10 }
 0x16d   : > { %p736_p8 = pneg %p735_p4 }
 0x16f   : > { %p741_p0 = pnand %p739_p9, %p736_p8 }
 0x171   : > { %744 = shalt.err (!%p741_p0)
}
 0x172   : > { %s811_s15 = smov 128   ;;  %s812_s18 = smov 8  }
 0x173   : > { %604 = dma.vmem_to_hbm [thread:$0]  (%p981_p10), %s402_s10, 256, %s1029_s4, [#allocation7], %s811_s15, %s811_s15, %s812_s18  }
 0x174   : > { %776 = dma.done.wait (%p981_p10), [#allocation7], 256  }
 0x175   : > { %778 = vsyncadd (%p981_p10), [#allocation7], 4294967040 }
 0x176 PF: > { %s24_s24 = sadd.s32 1, %s801_s24   ;;  %s1034_s20 = smov %s785_s21 }
 0x177   : > { %p21_p12 = scmp.ge.s32.totalorder %s24_s24, 5   ;;  %s1035_s21 = smov %s789_s0 }
 0x178   : > { %s1036_s0 = smov %s892_s5  ;;  %s1037_s22 = smov %s797_s23 }
 0x179   : > { %s1038_s23 = smov %s1040_s26  ;;  %23 = sbr.rel (!%p21_p12) target bundleno = 20 (0x14), region = 88 }
 0x180   :  { %417 = vsyncpa [#allocation6], 1 }
 0x181   :  { %419 = vsyncpa [#allocation6 + $0x1], 1 }
 0x182   :  { %420 = vsyncpa [#allocation7], 1 }
 0x183   :  { %422 = vsyncpa [#allocation7 + $0x1], 1 }

</bundles_post_ra>
